<compile_context>
chip_gen: v7x
topology: tpu7x:2x2x1
jax: 0.10.0
libtpu: 0.0.40
codegen_flags: <defaults>
</compile_context>

<pallas_src>
import jax
import jax.numpy as jnp
from jax.experimental import pallas as pl
from jax.experimental.pallas import tpu as pltpu

INPUT_DIM = 28 * 28        # 784
INPUT_DIM_PAD = 896        # 7 * 128, lane-aligned K for fc1
HIDDEN_DIM = 256
OUTPUT_DIM = 10
OUTPUT_DIM_PAD = 128       # lane-dense output store


def _round_up(n, m):
    return (n + m - 1) // m * m


def _mlp_kernel(x_ref, w1_ref, b1_ref, w2_ref, b2_ref, w3_ref, b3_ref, o_ref):
    # fc1 + ReLU  (bf16 operands, f32 accumulate on MXU; bias added in f32)
    h1 = jnp.dot(x_ref[...], w1_ref[...], preferred_element_type=jnp.float32)
    h1 = jnp.maximum(h1 + b1_ref[...], 0.0)
    # fc2 + ReLU
    h2 = jnp.dot(h1.astype(w2_ref.dtype), w2_ref[...],
                 preferred_element_type=jnp.float32)
    h2 = jnp.maximum(h2 + b2_ref[...], 0.0)
    # fc3 (logits over the lane-padded 128-wide output; cols 10..127 are zeros)
    logits = jnp.dot(h2.astype(w3_ref.dtype), w3_ref[...],
                     preferred_element_type=jnp.float32)
    o_ref[...] = (logits + b3_ref[...]).astype(o_ref.dtype)


def mlp_forward(x, params, *, batch_tile=512):
    """x: (B, 1, 28, 28) or (B, 784) float32. Returns (B, 10) float32."""
    w1, b1, w2, b2, w3, b3 = params
    B = x.shape[0]
    x2d = x.reshape(B, -1).astype(jnp.float32)   # x.view(x.size(0), -1)
    assert x2d.shape[1] == INPUT_DIM

    # Lane-align the fc1 contraction dim: zero-pad x cols and W1 rows 784 -> 896.
    x2d = jnp.pad(x2d, ((0, 0), (0, INPUT_DIM_PAD - INPUT_DIM)))
    w1p = jnp.pad(w1, ((0, INPUT_DIM_PAD - INPUT_DIM), (0, 0)))
    # Lane-dense output: zero-pad fc3 from 10 -> 128 output features.
    w3p = jnp.pad(w3, ((0, 0), (0, OUTPUT_DIM_PAD - OUTPUT_DIM)))
    b3p = jnp.pad(b3, ((0, 0), (0, OUTPUT_DIM_PAD - OUTPUT_DIM)))

    # bf16 weights/activations (f32 accumulation stays inside the kernel).
    x_bf = x2d.astype(jnp.bfloat16)
    w1_bf = w1p.astype(jnp.bfloat16)
    w2_bf = w2.astype(jnp.bfloat16)
    w3_bf = w3p.astype(jnp.bfloat16)

    # Batch grid: pad B up to a multiple of the tile so every block is full.
    tb = min(batch_tile, _round_up(B, 8))
    b_pad = _round_up(B, tb)
    if b_pad != B:
        x_bf = jnp.pad(x_bf, ((0, b_pad - B), (0, 0)))
    grid = (b_pad // tb,)

    out = pl.pallas_call(
        _mlp_kernel,
        out_shape=jax.ShapeDtypeStruct((b_pad, OUTPUT_DIM_PAD), jnp.float32),
        grid=grid,
        in_specs=[
            # Activations: tiled over the batch grid.
            pl.BlockSpec((tb, INPUT_DIM_PAD), lambda i: (i, 0)),
            # Weights / biases: same block every step -> fetched once, VMEM-resident.
            pl.BlockSpec((INPUT_DIM_PAD, HIDDEN_DIM), lambda i: (0, 0)),
            pl.BlockSpec((1, HIDDEN_DIM), lambda i: (0, 0)),
            pl.BlockSpec((HIDDEN_DIM, HIDDEN_DIM), lambda i: (0, 0)),
            pl.BlockSpec((1, HIDDEN_DIM), lambda i: (0, 0)),
            pl.BlockSpec((HIDDEN_DIM, OUTPUT_DIM_PAD), lambda i: (0, 0)),
            pl.BlockSpec((1, OUTPUT_DIM_PAD), lambda i: (0, 0)),
        ],
        out_specs=pl.BlockSpec((tb, OUTPUT_DIM_PAD), lambda i: (i, 0)),
        compiler_params=pltpu.CompilerParams(
            dimension_semantics=("parallel",),
            vmem_limit_bytes=32 * 1024 * 1024,
        ),
    )(x_bf, w1_bf, b1, w2_bf, b2, w3_bf, b3p)

    # Strip batch padding and the lane padding of the logits.
    return out[:B, :OUTPUT_DIM]


def init_params(key):
    """Deterministic init mimicking nn.Linear (uniform +/- 1/sqrt(fan_in)).
    Weights are stored already transposed: (in_features, out_features)."""
    def linear(key, fan_in, fan_out):
        kw, kb = jax.random.split(key)
        bound = 1.0 / jnp.sqrt(fan_in)
        w = jax.random.uniform(kw, (fan_in, fan_out), jnp.float32, -bound, bound)
        b = jax.random.uniform(kb, (1, fan_out), jnp.float32, -bound, bound)
        return w, b

    k1, k2, k3 = jax.random.split(key, 3)
    w1, b1 = linear(k1, INPUT_DIM, HIDDEN_DIM)
    w2, b2 = linear(k2, HIDDEN_DIM, HIDDEN_DIM)
    w3, b3 = linear(k3, HIDDEN_DIM, OUTPUT_DIM)
    return (w1, b1, w2, b2, w3, b3)


if __name__ == "__main__":
    key = jax.random.PRNGKey(0)
    kp, kx = jax.random.split(key)

    params = init_params(kp)
    # Small batch of 28x28 "images" (B, C=1, H=28, W=28), as the MLP implies.
    x = jax.random.normal(kx, (8, 1, 28, 28), jnp.float32)

    out = mlp_forward(x, params)
    out = jax.block_until_ready(out)

    # Plain-JAX reference replicating the kernel's bf16-weight / f32-accumulate path.
    w1, b1, w2, b2, w3, b3 = params
    xr = x.reshape(x.shape[0], -1)
    h = jnp.maximum(
        jnp.dot(xr.astype(jnp.bfloat16), w1.astype(jnp.bfloat16),
                preferred_element_type=jnp.float32) + b1, 0.0)
    h = jnp.maximum(
        jnp.dot(h.astype(jnp.bfloat16), w2.astype(jnp.bfloat16),
                preferred_element_type=jnp.float32) + b2, 0.0)
    ref = jnp.dot(h.astype(jnp.bfloat16), w3.astype(jnp.bfloat16),
                  preferred_element_type=jnp.float32) + b3

    assert out.shape == (8, OUTPUT_DIM)
    assert jnp.allclose(out, ref, atol=2e-2, rtol=2e-2)

    # TODO(synk): compute_loss (cross_entropy) and backward_step are training-side
    # utilities, not part of the forward pass, and are intentionally not kernelized.

    print("KERNEL_OK")
</pallas_src>

<mosaic_0001>
module attributes {stable_mosaic.version = 11 : i64} {
  func.func @_mlp_kernel(%arg0: i32, %arg1: memref<8x896xbf16, #tpu.memory_space<vmem>>, %arg2: memref<896x256xbf16, #tpu.memory_space<vmem>>, %arg3: memref<1x256xf32, #tpu.memory_space<vmem>>, %arg4: memref<256x256xbf16, #tpu.memory_space<vmem>>, %arg5: memref<1x256xf32, #tpu.memory_space<vmem>>, %arg6: memref<256x128xbf16, #tpu.memory_space<vmem>>, %arg7: memref<1x128xf32, #tpu.memory_space<vmem>>, %arg8: memref<8x128xf32, #tpu.memory_space<vmem>>) attributes {dimension_semantics = [#tpu.dimension_semantics<parallel>], iteration_bounds = array<i64: 1>, scalar_prefetch = 0 : i64, scratch_operands = 0 : i64, tpu.core_type = #tpu.core_type<tc>, window_params = [{transform_indices = @transform_0, window_bounds = array<i64: 8, 896>}, {pipeline_mode = #tpu.pipeline_mode<synchronous>, transform_indices = @transform_1, window_bounds = array<i64: 896, 256>}, {pipeline_mode = #tpu.pipeline_mode<synchronous>, transform_indices = @transform_2, window_bounds = array<i64: 1, 256>}, {pipeline_mode = #tpu.pipeline_mode<synchronous>, transform_indices = @transform_3, window_bounds = array<i64: 256, 256>}, {pipeline_mode = #tpu.pipeline_mode<synchronous>, transform_indices = @transform_4, window_bounds = array<i64: 1, 256>}, {pipeline_mode = #tpu.pipeline_mode<synchronous>, transform_indices = @transform_5, window_bounds = array<i64: 256, 128>}, {pipeline_mode = #tpu.pipeline_mode<synchronous>, transform_indices = @transform_6, window_bounds = array<i64: 1, 128>}, {transform_indices = @transform_7, window_bounds = array<i64: 8, 128>}]} {
    %c0 = arith.constant 0 : index
    %c0_0 = arith.constant 0 : index
    %0 = vector.load %arg1[%c0, %c0_0] : memref<8x896xbf16, #tpu.memory_space<vmem>>, vector<8x896xbf16>
    %c0_1 = arith.constant 0 : index
    %c0_2 = arith.constant 0 : index
    %1 = vector.load %arg2[%c0_1, %c0_2] : memref<896x256xbf16, #tpu.memory_space<vmem>>, vector<896x256xbf16>
    %cst = arith.constant dense<0.000000e+00> : vector<8x256xf32>
    %2 = tpu.matmul %0, %1, %cst {dimension_numbers = #tpu.dot_dimension_numbers<[1], [0], [0], [1], [0, 0, 1, 1], [], []>} : vector<8x896xbf16>, vector<896x256xbf16>, vector<8x256xf32> -> vector<8x256xf32>
    %c0_3 = arith.constant 0 : index
    %c0_4 = arith.constant 0 : index
    %3 = vector.load %arg3[%c0_3, %c0_4] : memref<1x256xf32, #tpu.memory_space<vmem>>, vector<1x256xf32>
    %4 = vector.broadcast %3 : vector<1x256xf32> to vector<8x256xf32>
    %5 = arith.addf %2, %4 : vector<8x256xf32>
    %cst_5 = arith.constant 0.000000e+00 : f32
    %6 = vector.broadcast %cst_5 : f32 to vector<8x256xf32>
    %7 = arith.maximumf %5, %6 : vector<8x256xf32>
    %8 = arith.truncf %7 : vector<8x256xf32> to vector<8x256xbf16>
    %c0_6 = arith.constant 0 : index
    %c0_7 = arith.constant 0 : index
    %9 = vector.load %arg4[%c0_6, %c0_7] : memref<256x256xbf16, #tpu.memory_space<vmem>>, vector<256x256xbf16>
    %cst_8 = arith.constant dense<0.000000e+00> : vector<8x256xf32>
    %10 = tpu.matmul %8, %9, %cst_8 {dimension_numbers = #tpu.dot_dimension_numbers<[1], [0], [0], [1], [0, 0, 1, 1], [], []>} : vector<8x256xbf16>, vector<256x256xbf16>, vector<8x256xf32> -> vector<8x256xf32>
    %c0_9 = arith.constant 0 : index
    %c0_10 = arith.constant 0 : index
    %11 = vector.load %arg5[%c0_9, %c0_10] : memref<1x256xf32, #tpu.memory_space<vmem>>, vector<1x256xf32>
    %12 = vector.broadcast %11 : vector<1x256xf32> to vector<8x256xf32>
    %13 = arith.addf %10, %12 : vector<8x256xf32>
    %cst_11 = arith.constant 0.000000e+00 : f32
    %14 = vector.broadcast %cst_11 : f32 to vector<8x256xf32>
    %15 = arith.maximumf %13, %14 : vector<8x256xf32>
    %16 = arith.truncf %15 : vector<8x256xf32> to vector<8x256xbf16>
    %c0_12 = arith.constant 0 : index
    %c0_13 = arith.constant 0 : index
    %17 = vector.load %arg6[%c0_12, %c0_13] : memref<256x128xbf16, #tpu.memory_space<vmem>>, vector<256x128xbf16>
    %cst_14 = arith.constant dense<0.000000e+00> : vector<8x128xf32>
    %18 = tpu.matmul %16, %17, %cst_14 {dimension_numbers = #tpu.dot_dimension_numbers<[1], [0], [0], [1], [0, 0, 1, 1], [], []>} : vector<8x256xbf16>, vector<256x128xbf16>, vector<8x128xf32> -> vector<8x128xf32>
    %c0_15 = arith.constant 0 : index
    %c0_16 = arith.constant 0 : index
    %19 = vector.load %arg7[%c0_15, %c0_16] : memref<1x128xf32, #tpu.memory_space<vmem>>, vector<1x128xf32>
    %20 = vector.broadcast %19 : vector<1x128xf32> to vector<8x128xf32>
    %21 = arith.addf %18, %20 : vector<8x128xf32>
    %c0_17 = arith.constant 0 : index
    %c0_18 = arith.constant 0 : index
    %22 = vector.load %arg8[%c0_17, %c0_18] : memref<8x128xf32, #tpu.memory_space<vmem>>, vector<8x128xf32>
    tpu.vector_store %arg8[%c0_17, %c0_18], %21 {strides = array<i32>} : memref<8x128xf32, #tpu.memory_space<vmem>>, vector<8x128xf32>,
    return
  }
  func.func @transform_0(%arg0: i32) -> (i32, i32) {
    %c0_i32 = arith.constant 0 : i32
    %c0_i32_0 = arith.constant 0 : i32
    return %arg0, %c0_i32 : i32, i32
  }
  func.func @transform_1(%arg0: i32) -> (i32, i32) {
    %c0_i32 = arith.constant 0 : i32
    %c0_i32_0 = arith.constant 0 : i32
    %c0_i32_1 = arith.constant 0 : i32
    return %c0_i32, %c0_i32_0 : i32, i32
  }
  func.func @transform_2(%arg0: i32) -> (i32, i32) {
    %c0_i32 = arith.constant 0 : i32
    %c0_i32_0 = arith.constant 0 : i32
    %c0_i32_1 = arith.constant 0 : i32
    return %c0_i32, %c0_i32_0 : i32, i32
  }
  func.func @transform_3(%arg0: i32) -> (i32, i32) {
    %c0_i32 = arith.constant 0 : i32
    %c0_i32_0 = arith.constant 0 : i32
    %c0_i32_1 = arith.constant 0 : i32
    return %c0_i32, %c0_i32_0 : i32, i32
  }
  func.func @transform_4(%arg0: i32) -> (i32, i32) {
    %c0_i32 = arith.constant 0 : i32
    %c0_i32_0 = arith.constant 0 : i32
    %c0_i32_1 = arith.constant 0 : i32
    return %c0_i32, %c0_i32_0 : i32, i32
  }
  func.func @transform_5(%arg0: i32) -> (i32, i32) {
    %c0_i32 = arith.constant 0 : i32
    %c0_i32_0 = arith.constant 0 : i32
    %c0_i32_1 = arith.constant 0 : i32
    return %c0_i32, %c0_i32_0 : i32, i32
  }
  func.func @transform_6(%arg0: i32) -> (i32, i32) {
    %c0_i32 = arith.constant 0 : i32
    %c0_i32_0 = arith.constant 0 : i32
    %c0_i32_1 = arith.constant 0 : i32
    return %c0_i32, %c0_i32_0 : i32, i32
  }
  func.func @transform_7(%arg0: i32) -> (i32, i32) {
    %c0_i32 = arith.constant 0 : i32
    %c0_i32_0 = arith.constant 0 : i32
    return %arg0, %c0_i32 : i32, i32
  }
}

</mosaic_0001>

<bundles_post_ra>
// kernel: tpu_custom_call.1
= control target key start
LH: loop header
LB: loop body
LE: loop exit
PB: predicated region body
PF: predicated region fallthrough
CT: control target
= control target key end

     0   :  { %12 = vsyncpa [#allocation3], 0  ;;  %s2110_s0 = inlined_call_operand.hbm [shape: bf16[8,896], index: 0, kind: input, shape index: {}]   ;;  %s2111_s1 = inlined_call_operand.hbm [shape: bf16[896,256], index: 1, kind: input, shape index: {}]   ;;  %s2112_s2 = inlined_call_operand.vmem [shape: f32[1,256], index: 2, kind: input, shape index: {}]   ;;  %s2113_s3 = inlined_call_operand.hbm [shape: bf16[256,256], index: 3, kind: input, shape index: {}]   ;;  %s2114_s4 = inlined_call_operand.vmem [shape: f32[1,256], index: 4, kind: input, shape index: {}]   ;;  %s2115_s5 = inlined_call_operand.hbm [shape: bf16[256,128], index: 5, kind: input, shape index: {}]   ;;  %s2116_s6 = inlined_call_operand.vmem [shape: f32[1,128], index: 6, kind: input, shape index: {}]   ;;  %s2117_s7 = inlined_call_operand.hbm [shape: f32[8,128], index: 7, kind: output, shape index: {}]  }
   0x1   :  { %13 = vsyncpa [#allocation6], 0 }
   0x2   :  { %14 = vsyncpa [#allocation9], 0 }
   0x3   :  { %15 = vsyncpa [#allocation4], 0  ;;  %s1973_s24 = smov [#allocation5]   ;;  %s1855_s28 = scalar_lea.hbm %s2111_s1, 14336 }
   0x4   :  { %s31_s25 = sshll.u32 %s1973_s24, 4  ;;  %p1856_p0 = scmp.ne.s32.totalorder %s2111_s1, %s1855_s28  ;;  %s32_s25 = int_to_ptr.vmem [resolvable:$true] %s31_s25 }
   0x5   :  { %p1859_p1 = scmp.lt.u32.totalorder %s1855_s28, %s2111_s1 }
   0x7   :  { %p1861_p2 = pnand %p1859_p1, %p1856_p0 }
   0x9   :  { %1864 = shalt.err (!%p1861_p2)
}
   0xa   :  { %s1865_s10 = scalar_lea.vmem %s32_s25, 14336  ;;  %p1870_p4 = scmp.lt.s32.totalorder %s32_s25, %s32_s25 }
   0xb   :  { %p1866_p3 = scmp.ne.s32.totalorder %s32_s25, %s1865_s10  ;;  %p1871_p5 = scmp.lt.s32.totalorder %s1865_s10, %s1865_s10 }
   0xd   :  { %p1872_p6 = por %p1871_p5, %p1870_p4 }
   0xf   :  { %p1873_p7 = pnand %p1872_p6, %p1866_p3 }
  0x11   :  { %1876 = shalt.err (!%p1873_p7)
}
  0x12   :  { %s1974_s11 = smov 128   ;;  %s1975_s12 = smov 8  }
  0x13   :  { %37 = dma.hbm_to_vmem [thread:$0]  %s2111_s1, 14336, %s32_s25, [#allocation6], %s1974_s11, %s1974_s11, %s1975_s12  }
  0x14   :  { %s1976_s15 = smov [#allocation2]   ;;  %s1977_s17 = smov [#allocation7]  }
  0x15   :  { %s22_s16 = sshll.u32 %s1976_s15, 4  ;;  %s45_s18 = sshll.u32 %s1977_s17, 4  ;;  %s23_s16 = int_to_ptr.vmem [resolvable:$true] %s22_s16  ;;  %s46_s18 = int_to_ptr.vmem [resolvable:$true] %s45_s18 }
  0x16   :  { %s1877_s21 = scalar_lea.hbm %s2110_s0, 448 }
  0x17   :  { %p1878_p8 = scmp.ne.s32.totalorder %s2110_s0, %s1877_s21  ;;  %p1881_p9 = scmp.lt.u32.totalorder %s1877_s21, %s2110_s0 }
  0x19   :  { %p1883_p10 = pnand %p1881_p9, %p1878_p8 }
  0x1b   :  { %1886 = shalt.err (!%p1883_p10)
}
  0x1c   :  { %s1887_s1 = scalar_lea.vmem %s23_s16, 448  ;;  %p1892_p12 = scmp.lt.s32.totalorder %s23_s16, %s23_s16 }
  0x1d   :  { %p1888_p11 = scmp.ne.s32.totalorder %s23_s16, %s1887_s1  ;;  %p1893_p13 = scmp.lt.s32.totalorder %s1887_s1, %s1887_s1 }
  0x1f   :  { %p1894_p0 = por %p1893_p13, %p1892_p12 }
  0x21   :  { %p1895_p1 = pnand %p1894_p0, %p1888_p11 }
  0x23   :  { %1898 = shalt.err (!%p1895_p1)
}
  0x24   :  { %25 = dma.hbm_to_vmem [thread:$0]  %s2110_s0, 448, %s23_s16, [#allocation3]  }
  0x25   :  { %s1899_s30 = scalar_lea.hbm %s2113_s3, 4096 }
  0x26   :  { %p1900_p2 = scmp.ne.s32.totalorder %s2113_s3, %s1899_s30  ;;  %p1903_p3 = scmp.lt.u32.totalorder %s1899_s30, %s2113_s3 }
  0x28   :  { %p1905_p4 = pnand %p1903_p3, %p1900_p2 }
  0x2a   :  { %1908 = shalt.err (!%p1905_p4)
}
  0x2b   :  { %s1909_s14 = scalar_lea.vmem %s46_s18, 4096  ;;  %p1914_p6 = scmp.lt.s32.totalorder %s46_s18, %s46_s18 }
  0x2c   :  { %p1910_p5 = scmp.ne.s32.totalorder %s46_s18, %s1909_s14  ;;  %p1915_p7 = scmp.lt.s32.totalorder %s1909_s14, %s1909_s14 }
  0x2e   :  { %p1916_p8 = por %p1915_p7, %p1914_p6 }
  0x30   :  { %p1917_p9 = pnand %p1916_p8, %p1910_p5 }
  0x32   :  { %1920 = shalt.err (!%p1917_p9)
}
  0x33   :  { %51 = dma.hbm_to_vmem [thread:$0]  %s2113_s3, 4096, %s46_s18, [#allocation6], %s1974_s11, %s1974_s11, %s1975_s12  }
  0x34   :  { %s1978_s16 = smov [#allocation8]   ;;  %s1921_s21 = scalar_lea.hbm %s2115_s5, 2048 }
  0x35   :  { %s59_s17 = sshll.u32 %s1978_s16, 4  ;;  %p1922_p10 = scmp.ne.s32.totalorder %s2115_s5, %s1921_s21  ;;  %s60_s17 = int_to_ptr.vmem [resolvable:$true] %s59_s17 }
  0x36   :  { %p1925_p11 = scmp.lt.u32.totalorder %s1921_s21, %s2115_s5 }
  0x38   :  { %p1927_p12 = pnand %p1925_p11, %p1922_p10 }
  0x3a   :  { %1930 = shalt.err (!%p1927_p12)
}
  0x3b   :  { %s1931_s1 = scalar_lea.vmem %s60_s17, 2048  ;;  %p1936_p0 = scmp.lt.s32.totalorder %s60_s17, %s60_s17 }
  0x3c   :  { %p1932_p13 = scmp.ne.s32.totalorder %s60_s17, %s1931_s1  ;;  %p1937_p1 = scmp.lt.s32.totalorder %s1931_s1, %s1931_s1 }
  0x3e   :  { %p1938_p2 = por %p1937_p1, %p1936_p0 }
  0x40   :  { %p1939_p3 = pnand %p1938_p2, %p1932_p13 }
  0x42   :  { %1942 = shalt.err (!%p1939_p3)
}
  0x43   :  { %s1979_s3 = smov 64   ;;  %s1980_s11 = smov 4  }
  0x44   :  { %65 = dma.hbm_to_vmem [thread:$0]  %s2115_s5, 2048, %s60_s17, [#allocation9], %s1979_s3, %s1979_s3, %s1980_s11  }
  0x45   :  { %1965 = dma.done.wait [#allocation3], 448  }
  0x46   :  { %1966 = vsyncadd [#allocation3], 4294966848 }
  0x47   :  { %1967 = dma.done.wait [#allocation6], 18432  }
  0x48   :  { %1968 = vsyncadd [#allocation6], 4294948864 }
  0x49   :  { %1969 = dma.done.wait [#allocation9], 2048  }
  0x4a   :  { %1970 = vsyncadd [#allocation9], 4294965248  ;;  %v1616_v0 = vld [vmem:[#allocation5 + $0x104] ss:$8 sps:$4 sm:$0xff]   ;;  %v1618_v1 = vld [vmem:[#allocation5 + $0x100] ss:$8 sps:$4 sm:$0xff]  }
  0x4b   :  { %835 = vmatprep.subr.bf16.mxu0 %v1616_v0  ;;  %v1619_v2 = vld [vmem:[#allocation5 + $0x114] ss:$8 sps:$4 sm:$0xff]   ;;  %v1621_v3 = vld [vmem:[#allocation5 + $0x110] ss:$8 sps:$4 sm:$0xff]   ;;  %v1622_v4 = vld [vmem:[#allocation5 + $0x124] ss:$8 sps:$4 sm:$0xff]  }
  0x4c   :  { %836 = vmatpush1.bf16.msra.mxu0 %v1618_v1  ;;  %v1624_v5 = vld [vmem:[#allocation5 + $0x120] ss:$8 sps:$4 sm:$0xff]   ;;  %v1625_v6 = vld [vmem:[#allocation5 + $0x134] ss:$8 sps:$4 sm:$0xff]   ;;  %v1627_v7 = vld [vmem:[#allocation5 + $0x130] ss:$8 sps:$4 sm:$0xff]  }
  0x4d   :  { %837 = vmatprep.subr.bf16.mxu0 %v1619_v2  ;;  %v1628_v8 = vld [vmem:[#allocation5 + $0x144] ss:$8 sps:$4 sm:$0xff]   ;;  %v1630_v9 = vld [vmem:[#allocation5 + $0x140] ss:$8 sps:$4 sm:$0xff]   ;;  %v1631_v10 = vld [vmem:[#allocation5 + $0x154] ss:$8 sps:$4 sm:$0xff]  }
  0x4e   :  { %v1633_v11 = vld [vmem:[#allocation5 + $0x150] ss:$8 sps:$4 sm:$0xff]   ;;  %v1634_v12 = vld [vmem:[#allocation5 + $0x164] ss:$8 sps:$4 sm:$0xff]   ;;  %v1636_v15 = vld [vmem:[#allocation5 + $0x160] ss:$8 sps:$4 sm:$0xff]  }
  0x4f   :  { %v2077_v13 = vld [vmem:[#allocation2 + $0x8] sm:$0xff]  ;;  %v1637_v16 = vld [vmem:[#allocation5 + $0x174] ss:$8 sps:$4 sm:$0xff]   ;;  %v1642_v19 = vld [vmem:[#allocation5 + $0x180] ss:$8 sps:$4 sm:$0xff]  }
  0x50   :  { %838 = vmatpush1.bf16.msra.mxu0 %v1621_v3  ;;  %v1407_v14 = vcombine.high %v2077_v13, %v2077_v13  ;;  %v1639_v17 = vld [vmem:[#allocation5 + $0x170] ss:$8 sps:$4 sm:$0xff]   ;;  %v1640_v18 = vld [vmem:[#allocation5 + $0x184] ss:$8 sps:$4 sm:$0xff]   ;;  %v1643_v20 = vld [vmem:[#allocation5 + $0x194] ss:$8 sps:$4 sm:$0xff]   ;;  %v1406_v54 = vcombine.low %v2077_v13, %v2077_v13 }
  0x51   :  { %839 = vmatprep.subr.bf16.mxu0 %v1622_v4  ;;  %v1687_v21 = vld [vmem:[#allocation5 + $0x4] ss:$8 sps:$4 sm:$0xff]   ;;  %v1689_v22 = vld [vmem:[#allocation5] ss:$8 sps:$4 sm:$0xff]   ;;  %v1693_v23 = vld [vmem:[#allocation5 + $0x14] ss:$8 sps:$4 sm:$0xff]  }
  0x52   :  { %867 = vmatprep.mubr.bf16.mxu0 %v1407_v14  ;;  %794 = vmatprep.subr.bf16.mxu1 %v1687_v21  ;;  %v1695_v24 = vld [vmem:[#allocation5 + $0x10] ss:$8 sps:$4 sm:$0xff]   ;;  %v1646_v26 = vld [vmem:[#allocation5 + $0x1a4] ss:$8 sps:$4 sm:$0xff]   ;;  %v1648_v28 = vld [vmem:[#allocation5 + $0x1a0] ss:$8 sps:$4 sm:$0xff]  }
  0x53   :  { %795 = vmatpush1.bf16.msra.mxu1 %v1689_v22  ;;  %v1645_v25 = vld [vmem:[#allocation5 + $0x190] ss:$8 sps:$4 sm:$0xff]   ;;  %v1699_v27 = vld [vmem:[#allocation5 + $0x24] ss:$8 sps:$4 sm:$0xff]   ;;  %v1701_v29 = vld [vmem:[#allocation5 + $0x20] ss:$8 sps:$4 sm:$0xff]  }
  0x54   :  { %840 = vmatpush1.bf16.msra.mxu0 %v1624_v5  ;;  %796 = vmatprep.subr.bf16.mxu1 %v1693_v23  ;;  %v1705_v30 = vld [vmem:[#allocation5 + $0x34] ss:$8 sps:$4 sm:$0xff]   ;;  %v1651_v32 = vld [vmem:[#allocation5 + $0x1b0] ss:$8 sps:$4 sm:$0xff]   ;;  %v1711_v34 = vld [vmem:[#allocation5 + $0x44] ss:$8 sps:$4 sm:$0xff]  }
  0x55   :  { %841 = vmatprep.subr.bf16.mxu0 %v1625_v6  ;;  %v1649_v31 = vld [vmem:[#allocation5 + $0x1b4] ss:$8 sps:$4 sm:$0xff]   ;;  %v1707_v33 = vld [vmem:[#allocation5 + $0x30] ss:$8 sps:$4 sm:$0xff]   ;;  %v1652_v35 = vld [vmem:[#allocation5 + $0x1c4] ss:$8 sps:$4 sm:$0xff]  }
  0x56   :  { %v1654_v36 = vld [vmem:[#allocation5 + $0x1c0] ss:$8 sps:$4 sm:$0xff]   ;;  %v1717_v38 = vld [vmem:[#allocation5 + $0x54] ss:$8 sps:$4 sm:$0xff]   ;;  %v1657_v40 = vld [vmem:[#allocation5 + $0x1d0] ss:$8 sps:$4 sm:$0xff]  }
  0x57   :  { %797 = vmatpush1.bf16.msra.mxu1 %v1695_v24  ;;  %v1713_v37 = vld [vmem:[#allocation5 + $0x40] ss:$8 sps:$4 sm:$0xff]   ;;  %v1655_v39 = vld [vmem:[#allocation5 + $0x1d4] ss:$8 sps:$4 sm:$0xff]   ;;  %v1719_v41 = vld [vmem:[#allocation5 + $0x50] ss:$8 sps:$4 sm:$0xff]  }
  0x58   :  { %842 = vmatpush1.bf16.msra.mxu0 %v1627_v7  ;;  %798 = vmatprep.subr.bf16.mxu1 %v1699_v27  ;;  %v1723_v42 = vld [vmem:[#allocation5 + $0x64] ss:$8 sps:$4 sm:$0xff]   ;;  %v1660_v44 = vld [vmem:[#allocation5 + $0x1e0] ss:$8 sps:$4 sm:$0xff]   ;;  %v1729_v46 = vld [vmem:[#allocation5 + $0x74] ss:$8 sps:$4 sm:$0xff]  }
  0x59   :  { %843 = vmatprep.subr.bf16.mxu0 %v1628_v8  ;;  %v1658_v43 = vld [vmem:[#allocation5 + $0x1e4] ss:$8 sps:$4 sm:$0xff]   ;;  %v1725_v45 = vld [vmem:[#allocation5 + $0x60] ss:$8 sps:$4 sm:$0xff]   ;;  %v1661_v47 = vld [vmem:[#allocation5 + $0x1f4] ss:$8 sps:$4 sm:$0xff]  }
  0x5a   :  { %v1663_v48 = vld [vmem:[#allocation5 + $0x1f0] ss:$8 sps:$4 sm:$0xff]   ;;  %v1735_v50 = vld [vmem:[#allocation5 + $0x84] ss:$8 sps:$4 sm:$0xff]   ;;  %v1666_v52 = vld [vmem:[#allocation5 + $0x200] ss:$8 sps:$4 sm:$0xff]  }
  0x5b   :  { %799 = vmatpush1.bf16.msra.mxu1 %v1701_v29  ;;  %v1731_v49 = vld [vmem:[#allocation5 + $0x70] ss:$8 sps:$4 sm:$0xff]   ;;  %v1668_v51 = vld [vmem:[#allocation5 + $0x204] ss:$8 sps:$4 sm:$0xff]   ;;  %v1737_v55 = vld [vmem:[#allocation5 + $0x80] ss:$8 sps:$4 sm:$0xff]  }
  0x5c   :  { %844 = vmatpush1.bf16.msra.mxu0 %v1630_v9  ;;  %800 = vmatprep.subr.bf16.mxu1 %v1705_v30  ;;  %v2081_v53 = vld [vmem:[#allocation2 + $0x10] sm:$0xff]  ;;  %v1749_v61 = vld [vmem:[#allocation5 + $0xa4] ss:$8 sps:$4 sm:$0xff]   ;;  %v1672_v63 = vld [vmem:[#allocation5 + $0x220] ss:$8 sps:$4 sm:$0xff]  }
  0x5d   :  { %845 = vmatprep.subr.bf16.mxu0 %v1631_v10  ;;  %v1741_v56 = vld [vmem:[#allocation5 + $0x94] ss:$8 sps:$4 sm:$0xff]   ;;  %v1409_v58 = vcombine.high %v2081_v53, %v2081_v53  ;;  %v1669_v59 = vld [vmem:[#allocation5 + $0x210] ss:$8 sps:$4 sm:$0xff]   ;;  %v1674_v62 = vld [vmem:[#allocation5 + $0x224] ss:$8 sps:$4 sm:$0xff]  }
  0x5e   :  { %v1671_v57 = vld [vmem:[#allocation5 + $0x214] ss:$8 sps:$4 sm:$0xff]   ;;  %v1743_v60 = vld [vmem:[#allocation5 + $0x90] ss:$8 sps:$4 sm:$0xff]   ;;  %v1751_v0 = vld [vmem:[#allocation5 + $0xa0] ss:$8 sps:$4 sm:$0xff]  }
  0x5f   :  { %801 = vmatpush1.bf16.msra.mxu1 %v1707_v33  ;;  %v1755_v1 = vld [vmem:[#allocation5 + $0xb4] ss:$8 sps:$4 sm:$0xff]   ;;  %v1757_v3 = vld [vmem:[#allocation5 + $0xb0] ss:$8 sps:$4 sm:$0xff]   ;;  %v81_v4 = vld [vmem:[#allocation2] sm:$0xff] }
  0x60   :  { %846 = vmatpush1.bf16.msra.mxu0 %v1633_v11  ;;  %802 = vmatprep.subr.bf16.mxu1 %v1711_v34  ;;  %v1677_v2 = vld [vmem:[#allocation5 + $0x234] ss:$8 sps:$4 sm:$0xff]   ;;  %v1675_v5 = vld [vmem:[#allocation5 + $0x230] ss:$8 sps:$4 sm:$0xff]   ;;  %v1761_v6 = vld [vmem:[#allocation5 + $0xc4] ss:$8 sps:$4 sm:$0xff]   ;;  %v1405_v7 = vcombine.high %v81_v4, %v81_v4 }
  0x61   :  { %847 = vmatprep.subr.bf16.mxu0 %v1634_v12  ;;  %v1680_v8 = vld [vmem:[#allocation5 + $0x244] ss:$8 sps:$4 sm:$0xff]   ;;  %v1678_v9 = vld [vmem:[#allocation5 + $0x240] ss:$8 sps:$4 sm:$0xff]   ;;  %v1767_v11 = vld [vmem:[#allocation5 + $0xd4] ss:$8 sps:$4 sm:$0xff]  }
  0x62   :  { %826 = vmatprep.mubr.bf16.mxu1 %v1405_v7  ;;  %v1763_v10 = vld [vmem:[#allocation5 + $0xc0] ss:$8 sps:$4 sm:$0xff]   ;;  %v1683_v12 = vld [vmem:[#allocation5 + $0x254] ss:$8 sps:$4 sm:$0xff]   ;;  %v1681_v13 = vld [vmem:[#allocation5 + $0x250] ss:$8 sps:$4 sm:$0xff]  }
  0x63   :  { %803 = vmatpush1.bf16.msra.mxu1 %v1713_v37  ;;  %v1769_v14 = vld [vmem:[#allocation5 + $0xd0] ss:$8 sps:$4 sm:$0xff]   ;;  %v1793_v23 = vld [vmem:[#allocation7 + $0x4] ss:$8 sps:$4 sm:$0xff]   ;;  %v1791_v27 = vld [vmem:[#allocation7] ss:$8 sps:$4 sm:$0xff]  }
  0x64   :  { %848 = vmatpush1.bf16.msra.mxu0 %v1636_v15  ;;  %804 = vmatprep.subr.bf16.mxu1 %v1717_v38  ;;  %v1773_v15 = vld [vmem:[#allocation5 + $0xe4] ss:$8 sps:$4 sm:$0xff]   ;;  %v1690_v21 = vld [vmem:[#allocation5 + $0x270] ss:$8 sps:$4 sm:$0xff]   ;;  %v1704_v29 = vld [vmem:[#allocation5 + $0x294] ss:$8 sps:$4 sm:$0xff]  }
  0x65   :  { %849 = vmatprep.subr.bf16.mxu0 %v1637_v16  ;;  %v1686_v16 = vld [vmem:[#allocation5 + $0x264] ss:$8 sps:$4 sm:$0xff]   ;;  %v1781_v22 = vld [vmem:[#allocation5 + $0xf0] ss:$8 sps:$4 sm:$0xff]   ;;  %v1797_v34 = vld [vmem:[#allocation7 + $0x20] ss:$8 sps:$4 sm:$0xff]  }
  0x66   :  { %v1698_v24 = vld [vmem:[#allocation5 + $0x284] ss:$8 sps:$4 sm:$0xff]   ;;  %v1794_v30 = vld [vmem:[#allocation7 + $0x10] ss:$8 sps:$4 sm:$0xff]   ;;  %v1716_v37 = vld [vmem:[#allocation5 + $0x2b4] ss:$8 sps:$4 sm:$0xff]  }
  0x67   :  { %805 = vmatpush1.bf16.msra.mxu1 %v1719_v41  ;;  %v1710_v33 = vld [vmem:[#allocation5 + $0x2a4] ss:$8 sps:$4 sm:$0xff]   ;;  %v1800_v38 = vld [vmem:[#allocation7 + $0x30] ss:$8 sps:$4 sm:$0xff]   ;;  %v1766_v7 = vld [vmem:[#allocation5 + $0x334] ss:$8 sps:$4 sm:$0xff]  }
  0x68   :  { %850 = vmatpush1.bf16.msra.mxu0 %v1639_v17  ;;  %806 = vmatprep.subr.bf16.mxu1 %v1723_v42  ;;  %v1684_v17 = vld [vmem:[#allocation5 + $0x260] ss:$8 sps:$4 sm:$0xff]   ;;  %v1722_v41 = vld [vmem:[#allocation5 + $0x2c4] ss:$8 sps:$4 sm:$0xff]  }
  0x69   :  { %851 = vmatprep.subr.bf16.mxu0 %v1640_v18  ;;  %v1775_v18 = vld [vmem:[#allocation5 + $0xe0] ss:$8 sps:$4 sm:$0xff]  }
  0x6a   :  { %v1803_v42 = vld [vmem:[#allocation7 + $0x40] ss:$8 sps:$4 sm:$0xff]  }
  0x6b   :  { %807 = vmatpush1.bf16.msra.mxu1 %v1725_v45  ;;  %v1728_v45 = vld [vmem:[#allocation5 + $0x2d4] ss:$8 sps:$4 sm:$0xff]  }
  0x6c   :  { %852 = vmatpush1.bf16.msra.mxu0 %v1642_v19  ;;  %808 = vmatprep.subr.bf16.mxu1 %v1729_v46  ;;  %v1779_v19 = vld [vmem:[#allocation5 + $0xf4] ss:$8 sps:$4 sm:$0xff]   ;;  %v1806_v46 = vld [vmem:[#allocation7 + $0x50] ss:$8 sps:$4 sm:$0xff]  }
  0x6d   :  { %853 = vmatprep.subr.bf16.mxu0 %v1643_v20  ;;  %v1692_v20 = vld [vmem:[#allocation5 + $0x274] ss:$8 sps:$4 sm:$0xff]  }
  0x6f   :  { %809 = vmatpush1.bf16.msra.mxu1 %v1731_v49  ;;  %v1734_v49 = vld [vmem:[#allocation5 + $0x2e4] ss:$8 sps:$4 sm:$0xff]  }
  0x70   :  { %854 = vmatpush1.bf16.msra.mxu0 %v1645_v25  ;;  %810 = vmatprep.subr.bf16.mxu1 %v1735_v50  ;;  %v1696_v25 = vld [vmem:[#allocation5 + $0x280] ss:$8 sps:$4 sm:$0xff]  }
  0x71   :  { %855 = vmatprep.subr.bf16.mxu0 %v1646_v26  ;;  %v1404_v26 = vcombine.low %v81_v4, %v81_v4  ;;  %v1809_v50 = vld [vmem:[#allocation7 + $0x60] ss:$8 sps:$4 sm:$0xff]   ;;  %v1760_v4 = vld [vmem:[#allocation5 + $0x324] ss:$8 sps:$4 sm:$0xff]  }
  0x73   :  { %811 = vmatpush1.bf16.msra.mxu1 %v1737_v55  ;;  %v1812_v55 = vld [vmem:[#allocation7 + $0x70] ss:$8 sps:$4 sm:$0xff]  }
  0x74   :  { %856 = vmatpush1.bf16.msra.mxu0 %v1648_v28  ;;  %812 = vmatprep.subr.bf16.mxu1 %v1741_v56  ;;  %v1796_v28 = vld [vmem:[#allocation7 + $0x14] ss:$8 sps:$4 sm:$0xff]   ;;  %v1738_v56 = vld [vmem:[#allocation5 + $0x2f0] ss:$8 sps:$4 sm:$0xff]  }
  0x75   :  { %857 = vmatprep.subr.bf16.mxu0 %v1649_v31  ;;  %v1702_v31 = vld [vmem:[#allocation5 + $0x290] ss:$8 sps:$4 sm:$0xff]  }
  0x77   :  { %813 = vmatpush1.bf16.msra.mxu1 %v1743_v60  ;;  %v1815_v60 = vld [vmem:[#allocation7 + $0x80] ss:$8 sps:$4 sm:$0xff]  }
  0x78   :  { %858 = vmatpush1.bf16.msra.mxu0 %v1651_v32  ;;  %814 = vmatprep.subr.bf16.mxu1 %v1749_v61  ;;  %v1799_v32 = vld [vmem:[#allocation7 + $0x24] ss:$8 sps:$4 sm:$0xff]   ;;  %v1746_v61 = vld [vmem:[#allocation5 + $0x300] ss:$8 sps:$4 sm:$0xff]  }
  0x79   :  { %859 = vmatprep.subr.bf16.mxu0 %v1652_v35  ;;  %v1708_v35 = vld [vmem:[#allocation5 + $0x2a0] ss:$8 sps:$4 sm:$0xff]  }
  0x7b   :  { %815 = vmatpush1.bf16.msra.mxu1 %v1751_v0  ;;  %v1818_v0 = vld [vmem:[#allocation7 + $0x90] ss:$8 sps:$4 sm:$0xff]  }
  0x7c   :  { %860 = vmatpush1.bf16.msra.mxu0 %v1654_v36  ;;  %816 = vmatprep.subr.bf16.mxu1 %v1755_v1  ;;  %v1802_v36 = vld [vmem:[#allocation7 + $0x34] ss:$8 sps:$4 sm:$0xff]   ;;  %v1752_v1 = vld [vmem:[#allocation5 + $0x310] ss:$8 sps:$4 sm:$0xff]  }
  0x7d   :  { %861 = vmatprep.subr.bf16.mxu0 %v1655_v39  ;;  %v1714_v39 = vld [vmem:[#allocation5 + $0x2b0] ss:$8 sps:$4 sm:$0xff]  }
  0x7f   :  { %817 = vmatpush1.bf16.msra.mxu1 %v1757_v3  ;;  %v1823_v3 = vld [vmem:[#allocation7 + $0xa4] ss:$8 sps:$4 sm:$0xff]  }
  0x80   :  { %862 = vmatpush1.bf16.msra.mxu0 %v1657_v40  ;;  %818 = vmatprep.subr.bf16.mxu1 %v1761_v6  ;;  %v1805_v40 = vld [vmem:[#allocation7 + $0x44] ss:$8 sps:$4 sm:$0xff]   ;;  %v1826_v6 = vld [vmem:[#allocation7 + $0xb4] ss:$8 sps:$4 sm:$0xff]  }
  0x81   :  { %863 = vmatprep.subr.bf16.mxu0 %v1658_v43  ;;  %v1720_v43 = vld [vmem:[#allocation5 + $0x2c0] ss:$8 sps:$4 sm:$0xff]  }
  0x83   :  { %819 = vmatpush1.bf16.msra.mxu1 %v1763_v10  ;;  %v1829_v10 = vld [vmem:[#allocation7 + $0xc4] ss:$8 sps:$4 sm:$0xff]  }
  0x84   :  { %864 = vmatpush1.bf16.msra.mxu0 %v1660_v44  ;;  %820 = vmatprep.subr.bf16.mxu1 %v1767_v11  ;;  %v1808_v44 = vld [vmem:[#allocation7 + $0x54] ss:$8 sps:$4 sm:$0xff]   ;;  %v1772_v11 = vld [vmem:[#allocation5 + $0x344] ss:$8 sps:$4 sm:$0xff]  }
  0x85   :  { %865 = vmatprep.subr.bf16.mxu0 %v1661_v47  ;;  %v1726_v47 = vld [vmem:[#allocation5 + $0x2d0] ss:$8 sps:$4 sm:$0xff]  }
  0x87   :  { %821 = vmatpush1.bf16.msra.mxu1 %v1769_v14  ;;  %v1778_v14 = vld [vmem:[#allocation5 + $0x354] ss:$8 sps:$4 sm:$0xff]  }
  0x88   :  { %866 = vmatpush1.bf16.msra.mxu0 %v1663_v48  ;;  %822 = vmatprep.subr.bf16.mxu1 %v1773_v15  ;;  %v1811_v48 = vld [vmem:[#allocation7 + $0x64] ss:$8 sps:$4 sm:$0xff]   ;;  %v1776_v15 = vld [vmem:[#allocation5 + $0x350] ss:$8 sps:$4 sm:$0xff]  }
  0x89   :  { %876 = vmatprep.subr.bf16.mxu0 %v1668_v51  ;;  %v1732_v51 = vld [vmem:[#allocation5 + $0x2e0] ss:$8 sps:$4 sm:$0xff]  }
  0x8b   :  { %868 = vmatmul.mubr.bf16.vlgmr.msra.gmra.mrb[0].mxu0 %v1406_v54  ;;  %823 = vmatpush1.bf16.msra.mxu1 %v1775_v18  ;;  %v1740_v54 = vld [vmem:[#allocation5 + $0x2f4] ss:$8 sps:$4 sm:$0xff]  }
  0x8c   :  { %877 = vmatpush1.bf16.msra.mxu0 %v1666_v52  ;;  %908 = vmatprep.mubr.bf16.mxu0 %v1409_v58  ;;  %v1814_v52 = vld [vmem:[#allocation7 + $0x74] ss:$8 sps:$4 sm:$0xff]   ;;  %v1748_v58 = vld [vmem:[#allocation5 + $0x304] ss:$8 sps:$4 sm:$0xff]  }
  0x8d   :  { %878 = vmatprep.subr.bf16.mxu0 %v1671_v57  ;;  %824 = vmatprep.subr.bf16.mxu1 %v1779_v19  ;;  %v1817_v57 = vld [vmem:[#allocation7 + $0x84] ss:$8 sps:$4 sm:$0xff]   ;;  %v1789_v18 = vld [vmem:[#allocation5 + $0x374] ss:$8 sps:$4 sm:$0xff]   ;;  %v1787_v19 = vld [vmem:[#allocation5 + $0x370] ss:$8 sps:$4 sm:$0xff]  }
  0x8f   :  { %825 = vmatpush1.bf16.msra.mxu1 %v1781_v22  ;;  %v1832_v22 = vld [vmem:[#allocation7 + $0xd4] ss:$8 sps:$4 sm:$0xff]  }
  0x90   :  { %879 = vmatpush1.bf16.msra.mxu0 %v1669_v59  ;;  %1166 = vmatprep.subr.bf16.mxu1 %v1793_v23  ;;  %v1408_v59 = vcombine.low %v2081_v53, %v2081_v53  ;;  %v1821_v53 = vld [vmem:[#allocation7 + $0xa0] ss:$8 sps:$4 sm:$0xff]   ;;  %v1835_v23 = vld [vmem:[#allocation7 + $0xe4] ss:$8 sps:$4 sm:$0xff]  }
  0x91   :  { %880 = vmatprep.subr.bf16.mxu0 %v1674_v62  ;;  %v1754_v62 = vld [vmem:[#allocation5 + $0x314] ss:$8 sps:$4 sm:$0xff]  }
  0x92   :  { %827 = vmatmul.mubr.bf16.vlgmr.msra.gmra.mrb[0].mxu1 %v1404_v26  ;;  %v1836_v26 = vld [vmem:[#allocation7 + $0xf0] ss:$8 sps:$4 sm:$0xff]  }
  0x93   :  { %1167 = vmatpush1.bf16.msra.mxu1 %v1791_v27  ;;  %v1839_v27 = vld [vmem:[#allocation8 + $0x40] sm:$0xff]  }
  0x94   :  { %881 = vmatpush1.bf16.msra.mxu0 %v1672_v63  ;;  %1168 = vmatprep.subr.bf16.mxu1 %v1796_v28  ;;  %v1820_v63 = vld [vmem:[#allocation7 + $0x94] ss:$8 sps:$4 sm:$0xff]  }
  0x95   :  { %882 = vmatprep.subr.bf16.mxu0 %v1677_v2  ;;  %v1981_v2 = vmov 0  }
  0x97   :  { %1169 = vmatpush1.bf16.msra.mxu1 %v1794_v30 }
  0x98   :  { %883 = vmatpush1.bf16.msra.mxu0 %v1675_v5  ;;  %1170 = vmatprep.subr.bf16.mxu1 %v1799_v32  ;;  %v1758_v5 = vld [vmem:[#allocation5 + $0x320] ss:$8 sps:$4 sm:$0xff]   ;;  %v199_v32 = vlaneseq }
  0x99   :  { %884 = vmatprep.subr.bf16.mxu0 %v1680_v8  ;;  %v1824_v8 = vld [vmem:[#allocation7 + $0xb0] ss:$8 sps:$4 sm:$0xff]  }
  0x9b   :  { %1171 = vmatpush1.bf16.msra.mxu1 %v1797_v34 }
  0x9c   :  { %885 = vmatpush1.bf16.msra.mxu0 %v1678_v9  ;;  %1172 = vmatprep.subr.bf16.mxu1 %v1802_v36  ;;  %v1764_v9 = vld [vmem:[#allocation5 + $0x330] ss:$8 sps:$4 sm:$0xff]  }
  0x9d   :  { %886 = vmatprep.subr.bf16.mxu0 %v1683_v12  ;;  %v1827_v12 = vld [vmem:[#allocation7 + $0xc0] ss:$8 sps:$4 sm:$0xff]  }
  0x9f   :  { %1173 = vmatpush1.bf16.msra.mxu1 %v1800_v38 }
  0xa0   :  { %887 = vmatpush1.bf16.msra.mxu0 %v1681_v13  ;;  %1174 = vmatprep.subr.bf16.mxu1 %v1805_v40  ;;  %v1770_v13 = vld [vmem:[#allocation5 + $0x340] ss:$8 sps:$4 sm:$0xff]  }
  0xa1   :  { %888 = vmatprep.subr.bf16.mxu0 %v1686_v16  ;;  %v1784_v16 = vld [vmem:[#allocation5 + $0x364] ss:$8 sps:$4 sm:$0xff]  }
  0xa3   :  { %1175 = vmatpush1.bf16.msra.mxu1 %v1803_v42 }
  0xa4   :  { %889 = vmatpush1.bf16.msra.mxu0 %v1684_v17  ;;  %1176 = vmatprep.subr.bf16.mxu1 %v1808_v44  ;;  %v1782_v17 = vld [vmem:[#allocation5 + $0x360] ss:$8 sps:$4 sm:$0xff]  }
  0xa5   :  { %890 = vmatprep.subr.bf16.mxu0 %v1692_v20  ;;  %v1790_v20 = vld [vmem:[#allocation2 + $0x18] ss:$0 sps:$4 sm:$0xff]  }
  0xa7   :  { %1177 = vmatpush1.bf16.msra.mxu1 %v1806_v46 }
  0xa8   :  { %891 = vmatpush1.bf16.msra.mxu0 %v1690_v21  ;;  %1178 = vmatprep.subr.bf16.mxu1 %v1811_v48  ;;  %v1830_v21 = vld [vmem:[#allocation7 + $0xd0] ss:$8 sps:$4 sm:$0xff]  }
  0xa9   :  { %892 = vmatprep.subr.bf16.mxu0 %v1698_v24  ;;  %v1833_v24 = vld [vmem:[#allocation7 + $0xe0] ss:$8 sps:$4 sm:$0xff]  }
  0xab   :  { %1179 = vmatpush1.bf16.msra.mxu1 %v1809_v50  ;;  %v1840_v50 = vld [vmem:[#allocation8] sm:$0xff]  }
  0xac   :  { %893 = vmatpush1.bf16.msra.mxu0 %v1696_v25  ;;  %1180 = vmatprep.subr.bf16.mxu1 %v1814_v52  ;;  %v1838_v25 = vld [vmem:[#allocation7 + $0xf4] ss:$8 sps:$4 sm:$0xff]   ;;  %v1841_v52 = vld [vmem:[#allocation8 + $0x48] sm:$0xff]  }
  0xad   :  { %894 = vmatprep.subr.bf16.mxu0 %v1704_v29 }
  0xaf   :  { %1181 = vmatpush1.bf16.msra.mxu1 %v1812_v55  ;;  %v1843_v55 = vld [vmem:[#allocation8 + $0x50] sm:$0xff]  }
  0xb0   :  { %895 = vmatpush1.bf16.msra.mxu0 %v1702_v31  ;;  %1182 = vmatprep.subr.bf16.mxu1 %v1817_v57  ;;  %v1845_v57 = vld [vmem:[#allocation8 + $0x58] sm:$0xff]  }
  0xb1   :  { %896 = vmatprep.subr.bf16.mxu0 %v1710_v33  ;;  %v200_v33 = vshrl.u32 %v199_v32, 7 }
  0xb3   :  { %1183 = vmatpush1.bf16.msra.mxu1 %v1815_v60  ;;  %v201_v34 = vsub.s32 0, %v200_v33  ;;  %v205_v36 = vsub.s32 1, %v200_v33  ;;  %v1848_v60 = vld [vmem:[#allocation8 + $0x20] sm:$0xff]  }
  0xb4   :  { %897 = vmatpush1.bf16.msra.mxu0 %v1708_v35  ;;  %1184 = vmatprep.subr.bf16.mxu1 %v1820_v63  ;;  %v197_v35 = vld [vmem:[%s2112_s2] sm:$0x3]  ;;  %v1851_v63 = vld [vmem:[#allocation8 + $0x70] sm:$0xff]  }
  0xb5   :  { %898 = vmatprep.subr.bf16.mxu0 %v1716_v37  ;;  %v202_v37 = vrot.slane %v197_v35, %v201_v34  ;;  %v206_v38 = vrot.slane %v197_v35, %v205_v36 }
  0xb7   :  { %1185 = vmatpush1.bf16.msra.mxu1 %v1818_v0  ;;  %v1852_v0 = vld [vmem:[#allocation8 + $0x30] sm:$0xff]  }
  0xb8   :  { %899 = vmatpush1.bf16.msra.mxu0 %v1714_v39  ;;  %1186 = vmatprep.subr.bf16.mxu1 %v1823_v3  ;;  %v994_v3 = vld [vmem:[%s2114_s4] sm:$0x3]  ;;  %s1982_s4 = smov [#allocation10]  }
  0xb9   :  { %900 = vmatprep.subr.bf16.mxu0 %v1722_v41  ;;  %s1393_s30 = sshll.u32 %s1982_s4, 4  ;;  %s1394_s30 = int_to_ptr.vmem [resolvable:$true] %s1393_s30 }
  0xba   :  { %s1943_s8 = scalar_lea.vmem %s1394_s30, 128  ;;  %p1948_p5 = scmp.lt.s32.totalorder %s1394_s30, %s1394_s30 }
  0xbb   :  { %1187 = vmatpush1.bf16.msra.mxu1 %v1821_v53  ;;  %v1003_v53 = vrot.slane %v994_v3, %v205_v36  ;;  %p1944_p4 = scmp.ne.s32.totalorder %s1394_s30, %s1943_s8  ;;  %p1949_p6 = scmp.lt.s32.totalorder %s1943_s8, %s1943_s8 }
  0xbc   :  { %901 = vmatpush1.bf16.msra.mxu0 %v1720_v43  ;;  %1188 = vmatprep.subr.bf16.mxu1 %v1826_v6 }
  0xbd   :  { %902 = vmatprep.subr.bf16.mxu0 %v1728_v45  ;;  %p1950_p7 = por %p1949_p6, %p1948_p5 }
  0xbf   :  { %1189 = vmatpush1.bf16.msra.mxu1 %v1824_v8  ;;  %p1951_p8 = pnand %p1950_p7, %p1944_p4 }
  0xc0   :  { %903 = vmatpush1.bf16.msra.mxu0 %v1726_v47  ;;  %1190 = vmatprep.subr.bf16.mxu1 %v1829_v10 }
  0xc1   :  { %904 = vmatprep.subr.bf16.mxu0 %v1734_v49 }
  0xc3   :  { %1191 = vmatpush1.bf16.msra.mxu1 %v1827_v12 }
  0xc4   :  { %905 = vmatpush1.bf16.msra.mxu0 %v1732_v51  ;;  %1192 = vmatprep.subr.bf16.mxu1 %v1832_v22 }
  0xc5   :  { %906 = vmatprep.subr.bf16.mxu0 %v1740_v54  ;;  %v1842_v54 = vld [vmem:[#allocation8 + $0x8] sm:$0xff]  }
  0xc7   :  { %1193 = vmatpush1.bf16.msra.mxu1 %v1830_v21 }
  0xc8   :  { %907 = vmatpush1.bf16.msra.mxu0 %v1738_v56  ;;  %1194 = vmatprep.subr.bf16.mxu1 %v1835_v23  ;;  %v1844_v56 = vld [vmem:[#allocation8 + $0x10] sm:$0xff]  }
  0xc9   :  { %917 = vmatprep.subr.bf16.mxu0 %v1748_v58  ;;  %v1846_v58 = vld [vmem:[#allocation8 + $0x18] sm:$0xff]  }
  0xcb   :  { %909 = vmatmul.mubr.bf16.vlgmr.msra.gmra.mrb[0].mxu0 %v1408_v59  ;;  %1195 = vmatpush1.bf16.msra.mxu1 %v1833_v24  ;;  %v1847_v59 = vld [vmem:[#allocation8 + $0x60] sm:$0xff]  }
  0xcc   :  { %918 = vmatpush1.bf16.msra.mxu0 %v1746_v61  ;;  %949 = vmatprep.mubr.bf16.mxu0 %v1981_v2  ;;  %v1849_v61 = vld [vmem:[#allocation8 + $0x68] sm:$0xff]   ;;  %v1854_v2 = vld [vmem:[#allocation8 + $0x38] sm:$0xff]  }
  0xcd   :  { %919 = vmatprep.subr.bf16.mxu0 %v1754_v62  ;;  %1196 = vmatprep.subr.bf16.mxu1 %v1838_v25  ;;  %v1850_v62 = vld [vmem:[#allocation8 + $0x28] sm:$0xff]  }
  0xcf   :  { %1197 = vmatpush1.bf16.msra.mxu1 %v1836_v26 }
  0xd0   :  { %920 = vmatpush1.bf16.msra.mxu0 %v1752_v1  ;;  %1572 = vmatprep.subr.bf16.mxu1 %v1839_v27  ;;  %v1853_v1 = vld [vmem:[#allocation8 + $0x78] sm:$0xff]  }
  0xd1   :  { %921 = vmatprep.subr.bf16.mxu0 %v1760_v4  ;;  %v999_v4 = vrot.slane %v994_v3, %v201_v34 }
  0xd4   :  { %922 = vmatpush1.bf16.msra.mxu0 %v1758_v5 }
  0xd5   :  { %923 = vmatprep.subr.bf16.mxu0 %v1766_v7 }
  0xd8   :  { %924 = vmatpush1.bf16.msra.mxu0 %v1764_v9 }
  0xd9   :  { %925 = vmatprep.subr.bf16.mxu0 %v1772_v11 }
  0xdc   :  { %926 = vmatpush1.bf16.msra.mxu0 %v1770_v13 }
  0xdd   :  { %927 = vmatprep.subr.bf16.mxu0 %v1778_v14 }
  0xe0   :  { %928 = vmatpush1.bf16.msra.mxu0 %v1776_v15 }
  0xe1   :  { %929 = vmatprep.subr.bf16.mxu0 %v1784_v16  ;;  %v1555_v16 = vld [vmem:[%s2116_s6] ss:$0 sm:$0xff] }
  0xe4   :  { %930 = vmatpush1.bf16.msra.mxu0 %v1782_v17 }
  0xe5   :  { %931 = vmatprep.subr.bf16.mxu0 %v1789_v18 }
  0xe8   :  { %932 = vmatpush1.bf16.msra.mxu0 %v1787_v19 }
  0xeb   :  { %950 = vmatmul.mubr.bf16.vlgmr.msra.gmra.mrb[0].mxu0 %v1790_v20 }
 0x165   :  { %v828_v28 = vpop.f32.mrb[0].mxu1 }
 0x166   :  { %v830_v29 = vpop.f32.mrb[1].mxu1  ;;  %v829_v39 = vadd.f32 %v828_v28, %v202_v37 }
 0x167   :  { %v832_v30 = vpop.f32.mrb[2].mxu1  ;;  %v831_v40 = vadd.f32 %v830_v29, %v206_v38 }
 0x168   :  { %v833_v31 = vpop.f32.mrb[3].mxu1 }
 0x1be   :  { %v951_v41 = vpop.f32.mrb[0].mxu0 }
 0x1bf   :  { %v1595_v42 = vadd.f32 %v951_v41, %v829_v39  ;;  %v953_v43 = vpop.f32.mrb[1].mxu0 }
 0x1c0   :  { %v1597_v44 = vadd.f32 %v953_v43, %v831_v40  ;;  %v955_v45 = vpop.f32.mrb[2].mxu0 }
 0x1c1   :  { %v958_v46 = vmax.f32 %v1595_v42, 0.0  ;;  %v956_v47 = vpop.f32.mrb[3].mxu0 }
 0x1c2   :  { %v959_v48 = vmax.f32 %v1597_v44, 0.0 }
 0x1c3   :  { %v960_v51 = vpack.c.bf16 %v958_v46, %v958_v46 }
 0x1c4   :  { %v961_v49 = vpack.c.bf16 %v959_v48, %v959_v48 }
 0x1c6   :  { %1198 = vmatprep.mubr.bf16.mxu1 %v961_v49 }
 0x1c7   :  { %1199 = vmatmul.mubr.bf16.vlgmr.msra.gmra.mrb[4].mxu1 %v960_v51 }
 0x1c8   :  { %1573 = vmatpush3.bf16.msra.mxu1 %v1840_v50 }
 0x1c9   :  { %1574 = vmatprep.subr.bf16.mxu1 %v1841_v52 }
 0x1cc   :  { %1575 = vmatpush3.bf16.msra.mxu1 %v1842_v54 }
 0x1cd   :  { %1576 = vmatprep.subr.bf16.mxu1 %v1843_v55 }
 0x1d0   :  { %1577 = vmatpush3.bf16.msra.mxu1 %v1844_v56 }
 0x1d1   :  { %1578 = vmatprep.subr.bf16.mxu1 %v1845_v57 }
 0x1d4   :  { %1579 = vmatpush3.bf16.msra.mxu1 %v1846_v58 }
 0x1d5   :  { %1580 = vmatprep.subr.bf16.mxu1 %v1847_v59 }
 0x1d8   :  { %1581 = vmatpush3.bf16.msra.mxu1 %v1848_v60 }
 0x1d9   :  { %1582 = vmatprep.subr.bf16.mxu1 %v1849_v61 }
 0x1dc   :  { %1583 = vmatpush3.bf16.msra.mxu1 %v1850_v62 }
 0x1dd   :  { %1584 = vmatprep.subr.bf16.mxu1 %v1851_v63 }
 0x1e0   :  { %1585 = vmatpush3.bf16.msra.mxu1 %v1852_v0 }
 0x1e1   :  { %1586 = vmatprep.subr.bf16.mxu1 %v1853_v1 }
 0x1e4   :  { %1587 = vmatpush3.bf16.msra.mxu1 %v1854_v2 }
 0x29a   :  { %v1200_v5 = vpop.f32.mrb[4].mxu1 }
 0x29b   :  { %v1201_v6 = vadd.f32 %v1200_v5, %v999_v4  ;;  %v1202_v7 = vpop.f32.mrb[5].mxu1 }
 0x29c   :  { %v1203_v8 = vadd.f32 %v1202_v7, %v1003_v53  ;;  %v1204_v9 = vpop.f32.mrb[6].mxu1 }
 0x29d   :  { %v1207_v10 = vmax.f32 %v1201_v6, 0.0  ;;  %v1205_v11 = vpop.f32.mrb[7].mxu1 }
 0x29e   :  { %v1208_v12 = vmax.f32 %v1203_v8, 0.0 }
 0x29f   :  { %v1209_v14 = vpack.c.bf16 %v1207_v10, %v1207_v10 }
 0x2a0   :  { %v1210_v13 = vpack.c.bf16 %v1208_v12, %v1208_v12 }
 0x2a2   :  { %1378 = vmatprep.mubr.bf16.mxu1 %v1210_v13 }
 0x2a3   :  { %1379 = vmatmul.mubr.bf16.vlgmr.msra.gmra.mrb[8].mxu1 %v1209_v14 }
 0x376   :  { %v1588_v15 = vpop.f32.mrb[8].mxu1 }
 0x377   :  { %v1589_v17 = vpop.f32.mrb[9].mxu1 }
 0x378   :  { %v1590_v18 = vadd.f32 %v1589_v17, %v1588_v15  ;;  %v1591_v19 = vpop.f32.mrb[10].mxu1 }
 0x379   :  { %v1592_v20 = vpop.f32.mrb[11].mxu1 }
 0x37a   :  { %v1381_v21 = vadd.f32 %v1590_v18, %v1555_v16 }
 0x37c   :  { %1386 = vst [vmem:[#allocation10] sm:$0xff] %v1381_v21 }
 0x37d   :  { %1954 = shalt.err (!%p1951_p8)
}
 0x37e   :  { %s1955_s6 = scalar_lea.hbm %s2117_s7, 128 }
 0x37f   :  { %p1956_p9 = scmp.ne.s32.totalorder %s2117_s7, %s1955_s6  ;;  %p1959_p10 = scmp.lt.u32.totalorder %s1955_s6, %s2117_s7 }
 0x381   :  { %p1961_p11 = pnand %p1959_p10, %p1956_p9 }
 0x383   :  { %1964 = shalt.err (!%p1961_p11)
}
 0x384   :  { %1396 = dma.vmem_to_hbm [thread:$0]  %s1394_s30, 128, %s2117_s7, [#allocation4]  }
 0x385   :  { %1971 = dma.done.wait [#allocation4], 128  }
 0x386   :  { %1972 = vsyncadd [#allocation4], 4294967168 }
 0x387   :  { %1400 = vsyncpa [#allocation3], 1 }
 0x388   :  { %1401 = vsyncpa [#allocation6], 1 }
 0x389   :  { %1402 = vsyncpa [#allocation9], 1 }
 0x38a   :  { %1403 = vsyncpa [#allocation4], 1 }

</bundles_post_ra>
